<compile_context>
chip_gen: v6e
topology: v6e:2x2x1
jax: 0.10.0
libtpu: 0.0.40
codegen_flags: <defaults>
</compile_context>

<pallas_src>
from functools import partial

import jax
import jax.numpy as jnp
from jax.experimental import pallas as pl
from jax.experimental.pallas import tpu as pltpu


# ----------------------------------------------------------------------------
# helpers
# ----------------------------------------------------------------------------
def _round_up(n, m):
    return ((n + m - 1) // m) * m


def _vmem_limit_bytes():
    """Generation-aware VMEM budget with headroom for Mosaic internal scratch."""
    cap = 64 * 1024 * 1024                      # conservative (v7x physical VMEM)
    try:
        cap = int(pltpu.get_tpu_info().vmem_capacity_bytes)
    except Exception:
        pass
    # leave 16 MiB headroom; cap at 112 MiB on the 128 MiB parts (v5e/v6e)
    return max(32 * 1024 * 1024, min(cap - 16 * 1024 * 1024, 112 * 1024 * 1024))


def _pick_mode_tile(mp, per_mode_bytes, vmem_budget):
    """Largest lane-dense mode tile whose double-buffered footprint fits."""
    limit = int(vmem_budget * 0.6)              # leave room for scratch/overheads
    for t in (1024, 512, 256, 128):
        if mp % t == 0 and 2 * per_mode_bytes * t <= limit:
            return t
    return min(mp, 128)


def _pick_batch_tile(b, cout, t_m):
    """Largest divisor of B keeping the two f32 accumulators within ~32 vregs."""
    cap = max(1, (128 * 1024) // (2 * 4 * cout * t_m))
    t = 1
    for d in range(1, b + 1):
        if b % d == 0 and d <= cap:
            t = d
    return t


# ----------------------------------------------------------------------------
# MXU kernel: batched matmul over modes (Cin contraction on the MXU)
# ----------------------------------------------------------------------------
def _compl_mul_mxu_kernel(ar_ref, ai_ref, wr_ref, ws_ref, wd_ref,
                          or_ref, oi_ref):
    """Block shapes:
         ar, ai      : (tM, B, Cin)      activation real / imag (compute dtype)
         wr, ws, wd  : (tM, Cin, Cout)   Re(w), Re+Im, Im-Re  (Gauss planes)
         or, oi      : (tM, B, Cout)     f32 outputs
       Per mode m:  out[m] = a[m] @ w[m]   (complex, Gauss 3-matmul form).
    """
    a_r = ar_ref[...]
    a_i = ai_ref[...]
    # contract Cin (lhs dim 2, rhs dim 1); batch over the mode dim (dim 0)
    dn = (((2,), (1,)), ((0,), (0,)))
    k1 = jax.lax.dot_general(a_r + a_i, wr_ref[...], dn,
                             preferred_element_type=jnp.float32)
    k2 = jax.lax.dot_general(a_r, wd_ref[...], dn,
                             preferred_element_type=jnp.float32)
    k3 = jax.lax.dot_general(a_i, ws_ref[...], dn,
                             preferred_element_type=jnp.float32)
    or_ref[...] = k1 - k3          # Re = ar*wr - ai*wi
    oi_ref[...] = k1 + k2          # Im = ar*wi + ai*wr


def _compl_mul2d_mxu(ar, ai, wr, ws, wd):
    """ar/ai: (Mp, B, Cin); wr/ws/wd: (Mp, Cin, Cout) -> 2x (Mp, B, Cout) f32."""
    mp, b, cin = ar.shape
    cout = wr.shape[2]
    isz = jnp.dtype(ar.dtype).itemsize
    per_mode = (2 * b * cin + 3 * cin * cout) * isz + 2 * b * cout * 4
    vmem_limit = _vmem_limit_bytes()
    t_m = _pick_mode_tile(mp, per_mode, vmem_limit)

    a_spec = pl.BlockSpec((t_m, b, cin), lambda m: (m, 0, 0))
    w_spec = pl.BlockSpec((t_m, cin, cout), lambda m: (m, 0, 0))
    o_spec = pl.BlockSpec((t_m, b, cout), lambda m: (m, 0, 0))
    out_shape = (jax.ShapeDtypeStruct((mp, b, cout), jnp.float32),
                 jax.ShapeDtypeStruct((mp, b, cout), jnp.float32))
    return pl.pallas_call(
        _compl_mul_mxu_kernel,
        grid=(mp // t_m,),
        in_specs=[a_spec, a_spec, w_spec, w_spec, w_spec],
        out_specs=[o_spec, o_spec],
        out_shape=out_shape,
        compiler_params=pltpu.CompilerParams(
            dimension_semantics=("parallel",),
            vmem_limit_bytes=vmem_limit,
        ),
    )(ar, ai, wr, ws, wd)


# ----------------------------------------------------------------------------
# VPU kernel: naive 4-mult complex MAC (tiny channel counts only)
# ----------------------------------------------------------------------------
def _compl_mul_vpu_kernel(ar_ref, ai_ref, wr_ref, wi_ref, or_ref, oi_ref):
    """Block shapes:
         ar, ai : (Cin, tB, 1, tM)    activation real / imag
         wr, wi : (Cin, 1, Cout, tM)  weight real / imag (only 2 planes)
         or, oi : (tB, Cout, tM)      f32 outputs
       out[b,o,m] = sum_i a[i,b,m] * w[i,o,m]   (complex, naive 4-mult).
    """
    cin = ar_ref.shape[0]

    def body(i, carry):
        acc_r, acc_i = carry
        a_r = ar_ref[i]                      # (tB, 1, tM)  - singleton dim is
        a_i = ai_ref[i]                      #   already in the block layout
        w_r = wr_ref[i]                      # (1, Cout, tM)
        w_i = wi_ref[i]
        acc_r = acc_r + (a_r * w_r).astype(jnp.float32) \
                      - (a_i * w_i).astype(jnp.float32)
        acc_i = acc_i + (a_r * w_i).astype(jnp.float32) \
                      + (a_i * w_r).astype(jnp.float32)
        return acc_r, acc_i

    zeros = jnp.zeros(or_ref.shape, jnp.float32)
    unroll = min(cin, 4)                     # keep live ranges / spills bounded
    acc_r, acc_i = jax.lax.fori_loop(0, cin, body, (zeros, zeros),
                                     unroll=unroll)
    or_ref[...] = acc_r
    oi_ref[...] = acc_i


def _compl_mul2d_vpu(ar, ai, wr, wi):
    """ar/ai: (Cin, B, 1, Mp); wr/wi: (Cin, 1, Cout, Mp) -> 2x (B, Cout, Mp)."""
    cin, b, _, mp = ar.shape
    cout = wr.shape[2]
    isz = jnp.dtype(ar.dtype).itemsize
    tb_guess = min(b, 8)
    per_mode = (2 * cin * tb_guess + 2 * cin * cout) * isz + 2 * tb_guess * cout * 4
    vmem_limit = _vmem_limit_bytes()
    t_m = _pick_mode_tile(mp, per_mode, vmem_limit)
    t_b = _pick_batch_tile(b, cout, t_m)

    a_spec = pl.BlockSpec((cin, t_b, 1, t_m), lambda m, bb: (0, bb, 0, m))
    w_spec = pl.BlockSpec((cin, 1, cout, t_m), lambda m, bb: (0, 0, 0, m))
    o_spec = pl.BlockSpec((t_b, cout, t_m), lambda m, bb: (bb, 0, m))
    out_shape = (jax.ShapeDtypeStruct((b, cout, mp), jnp.float32),
                 jax.ShapeDtypeStruct((b, cout, mp), jnp.float32))
    return pl.pallas_call(
        _compl_mul_vpu_kernel,
        # batch innermost: weight blocks (index depends only on m) are reused
        # across consecutive grid steps, so Pallas skips their re-DMA.
        grid=(mp // t_m, b // t_b),
        in_specs=[a_spec, a_spec, w_spec, w_spec],
        out_specs=[o_spec, o_spec],
        out_shape=out_shape,
        compiler_params=pltpu.CompilerParams(
            dimension_semantics=("parallel", "parallel"),
            vmem_limit_bytes=vmem_limit,
        ),
    )(ar, ai, wr, wi)


# ----------------------------------------------------------------------------
# wrapper: one-time weight pre-layout + forward pass
# ----------------------------------------------------------------------------
def prepare_spectral_weights(weights1, weights2, compute_dtype=jnp.float32,
                             force_path=None):
    """One-time re-layout of the parameters (call OUTSIDE the per-step call).

    weights1/2: (Cin, Cout, modes1, modes2, 2) float32 (last dim = re/im).
    The two frequency corners are folded into one mode axis M = 2*modes1*modes2
    and padded to Mp (multiple of 128, lane-dense).

    MXU path (Cin or Cout > 8): planes = (wr, wr+wi, wi-wr), each (Mp, Cin, Cout).
    VPU path (tiny channels):   planes = (wr, wi), each (Cin, 1, Cout, Mp).
    """
    cin, cout, m1, m2, _ = weights1.shape
    m = 2 * m1 * m2
    mp = _round_up(m, 128)
    if force_path is None:
        use_mxu = (cin > 8) or (cout > 8)
    else:
        use_mxu = (force_path == "mxu")

    w = jnp.concatenate([weights1.reshape(cin, cout, m1 * m2, 2),
                         weights2.reshape(cin, cout, m1 * m2, 2)],
                        axis=2)                           # (Cin, Cout, M, 2)
    wr = w[..., 0].astype(jnp.float32)
    wi = w[..., 1].astype(jnp.float32)

    if use_mxu:
        wr_t = jnp.pad(jnp.transpose(wr, (2, 0, 1)), ((0, mp - m), (0, 0), (0, 0)))
        wi_t = jnp.pad(jnp.transpose(wi, (2, 0, 1)), ((0, mp - m), (0, 0), (0, 0)))
        planes = (wr_t.astype(compute_dtype),
                  (wr_t + wi_t).astype(compute_dtype),
                  (wi_t - wr_t).astype(compute_dtype))
    else:
        wr_p = jnp.pad(wr, ((0, 0), (0, 0), (0, mp - m))).reshape(cin, 1, cout, mp)
        wi_p = jnp.pad(wi, ((0, 0), (0, 0), (0, mp - m))).reshape(cin, 1, cout, mp)
        planes = (wr_p.astype(compute_dtype), wi_p.astype(compute_dtype))

    return {"use_mxu": use_mxu, "planes": planes, "cin": cin, "cout": cout,
            "modes1": m1, "modes2": m2, "m": m, "mp": mp,
            "compute_dtype": compute_dtype}


def spectral_conv2d_prepared(x, prep):
    """Forward pass with pre-laid-out weights (see prepare_spectral_weights).

    x: (B, Cin, H, W) float32 (NCHW, like PyTorch).  Returns (B, Cout, H, W).
    As in the PyTorch reference, if 2*modes1 > H the two corner writes overlap
    and the second one wins (consistent with the module, not a bug).
    """
    b, cin, h, w = x.shape
    cout, m1, m2 = prep["cout"], prep["modes1"], prep["modes2"]
    m, mp, cdt = prep["m"], prep["mp"], prep["compute_dtype"]
    wf = w // 2 + 1

    # torch.rfft(x, 2, normalized=True, onesided=True) == rfft2(norm="ortho")
    x_ft = jnp.fft.rfft2(x, norm="ortho")                   # (B, Cin, H, Wf) c64
    a = jnp.concatenate(
        [x_ft[:, :, :m1, :m2].reshape(b, cin, m1 * m2),     # low-freq corner
         x_ft[:, :, h - m1:, :m2].reshape(b, cin, m1 * m2)],  # high-freq corner
        axis=-1)                                            # (B, Cin, M)

    if prep["use_mxu"]:
        a = jnp.transpose(a, (2, 0, 1))                     # (M, B, Cin)
        pad = ((0, mp - m), (0, 0), (0, 0))
        ar = jnp.pad(jnp.real(a), pad).astype(cdt)
        ai = jnp.pad(jnp.imag(a), pad).astype(cdt)
        out_r, out_i = _compl_mul2d_mxu(ar, ai, *prep["planes"])  # (Mp,B,Cout)
        out = (out_r[:m] + 1j * out_i[:m]).astype(jnp.complex64)
        out = jnp.transpose(out, (1, 2, 0))                 # (B, Cout, M)
    else:
        a = jnp.transpose(a, (1, 0, 2)).reshape(cin, b, 1, m)  # (Cin, B, 1, M)
        pad = ((0, 0), (0, 0), (0, 0), (0, mp - m))
        ar = jnp.pad(jnp.real(a), pad).astype(cdt)
        ai = jnp.pad(jnp.imag(a), pad).astype(cdt)
        out_r, out_i = _compl_mul2d_vpu(ar, ai, *prep["planes"])  # (B,Cout,Mp)
        out = (out_r[..., :m] + 1j * out_i[..., :m]).astype(jnp.complex64)

    out = out.reshape(b, cout, 2, m1, m2)
    out_ft = jnp.zeros((b, cout, h, wf), jnp.complex64)
    out_ft = out_ft.at[:, :, :m1, :m2].set(out[:, :, 0])
    out_ft = out_ft.at[:, :, h - m1:, :m2].set(out[:, :, 1])

    # torch.irfft(..., normalized=True, onesided=True, signal_sizes=(H, W))
    return jnp.fft.irfft2(out_ft, s=(h, w), norm="ortho")


def spectral_conv2d(x, weights1, weights2, modes1, modes2,
                    compute_dtype=jnp.float32, force_path=None):
    """Convenience forward taking raw PyTorch-layout weights.

    compute_dtype=jnp.bfloat16 is an option on v6e/v7x (f32 accumulation in
    the kernel); keep float32 on v5e.
    """
    del modes1, modes2  # encoded in the weight shapes
    prep = prepare_spectral_weights(weights1, weights2, compute_dtype, force_path)
    return spectral_conv2d_prepared(x, prep)


# ----------------------------------------------------------------------------
# pure-JAX reference reproducing the PyTorch forward (for verification)
# ----------------------------------------------------------------------------
def _reference_spectral_conv2d(x, weights1, weights2, modes1, modes2):
    b, cin, h, w = x.shape
    cout = weights1.shape[1]
    wf = w // 2 + 1
    x_ft = jnp.fft.rfft2(x, norm="ortho")
    w1c = weights1[..., 0] + 1j * weights1[..., 1]
    w2c = weights2[..., 0] + 1j * weights2[..., 1]
    out_ft = jnp.zeros((b, cout, h, wf), jnp.complex64)
    out_ft = out_ft.at[:, :, :modes1, :modes2].set(
        jnp.einsum('bixy,ioxy->boxy', x_ft[:, :, :modes1, :modes2], w1c))
    out_ft = out_ft.at[:, :, h - modes1:, :modes2].set(
        jnp.einsum('bixy,ioxy->boxy', x_ft[:, :, h - modes1:, :modes2], w2c))
    return jnp.fft.irfft2(out_ft, s=(h, w), norm="ortho")


if __name__ == "__main__":
    key = jax.random.PRNGKey(0)
    k1, k2, k3, k4, k5, k6 = jax.random.split(key, 6)

    # ---- case 1: tiny channels -> VPU (elementwise) path -------------------
    B, Cin, Cout, H, W = 2, 4, 4, 16, 16
    m1, m2 = 4, 4
    x = jax.random.normal(k1, (B, Cin, H, W), dtype=jnp.float32)
    scale = 1.0 / (Cin * Cout)
    w1 = scale * jax.random.uniform(k2, (Cin, Cout, m1, m2, 2), dtype=jnp.float32)
    w2 = scale * jax.random.uniform(k3, (Cin, Cout, m1, m2, 2), dtype=jnp.float32)

    y = spectral_conv2d(x, w1, w2, m1, m2)
    y = jax.block_until_ready(y)
    y_ref = _reference_spectral_conv2d(x, w1, w2, m1, m2)
    assert y.shape == (B, Cout, H, W)
    assert jnp.allclose(y, y_ref, atol=1e-5, rtol=1e-5), "VPU-path mismatch vs ref"

    # ---- case 2: wider channels -> MXU (batched matmul) path ---------------
    Cin2 = Cout2 = 16
    x2 = jax.random.normal(k4, (B, Cin2, H, W), dtype=jnp.float32)
    scale2 = 1.0 / (Cin2 * Cout2)
    w1b = scale2 * jax.random.uniform(k5, (Cin2, Cout2, m1, m2, 2), dtype=jnp.float32)
    w2b = scale2 * jax.random.uniform(k6, (Cin2, Cout2, m1, m2, 2), dtype=jnp.float32)

    y2 = spectral_conv2d(x2, w1b, w2b, m1, m2)
    y2 = jax.block_until_ready(y2)
    y2_ref = _reference_spectral_conv2d(x2, w1b, w2b, m1, m2)
    assert y2.shape == (B, Cout2, H, W)
    # MXU f32 matmuls may use reduced-precision passes -> matmul-grade tolerance
    assert jnp.allclose(y2, y2_ref, atol=2e-3, rtol=2e-3), "MXU-path mismatch vs ref"

    print("KERNEL_OK")
</pallas_src>

<mosaic_0001>
module attributes {stable_mosaic.version = 11 : i64} {
  func.func @_compl_mul_vpu_kernel(%arg0: i32, %arg1: i32, %arg2: memref<4x2x1x128xf32, #tpu.memory_space<vmem>>, %arg3: memref<4x2x1x128xf32, #tpu.memory_space<vmem>>, %arg4: memref<4x1x4x128xf32, #tpu.memory_space<vmem>>, %arg5: memref<4x1x4x128xf32, #tpu.memory_space<vmem>>, %arg6: memref<2x4x128xf32, #tpu.memory_space<vmem>>, %arg7: memref<2x4x128xf32, #tpu.memory_space<vmem>>) attributes {dimension_semantics = [#tpu.dimension_semantics<parallel>, #tpu.dimension_semantics<parallel>], iteration_bounds = array<i64: 1, 1>, scalar_prefetch = 0 : i64, scratch_operands = 0 : i64, tpu.core_type = #tpu.core_type<tc>, window_params = [{transform_indices = @transform_0, window_bounds = array<i64: 4, 2, 1, 128>}, {transform_indices = @transform_1, window_bounds = array<i64: 4, 2, 1, 128>}, {transform_indices = @transform_2, window_bounds = array<i64: 4, 1, 4, 128>}, {transform_indices = @transform_3, window_bounds = array<i64: 4, 1, 4, 128>}, {transform_indices = @transform_4, window_bounds = array<i64: 2, 4, 128>}, {transform_indices = @transform_5, window_bounds = array<i64: 2, 4, 128>}]} {
    %cst = arith.constant 0.000000e+00 : f32
    %0 = vector.broadcast %cst : f32 to vector<2x4x128xf32>
    %c0_i32 = arith.constant 0 : i32
    %1 = arith.index_cast %c0_i32 : i32 to index
    %c0 = arith.constant 0 : index
    %c0_0 = arith.constant 0 : index
    %c0_1 = arith.constant 0 : index
    %2 = vector.load %arg2[%1, %c0, %c0_0, %c0_1] : memref<4x2x1x128xf32, #tpu.memory_space<vmem>>, vector<1x2x1x128xf32>
    %3 = vector.shape_cast %2 : vector<1x2x1x128xf32> to vector<2x1x128xf32>
    %4 = arith.index_cast %c0_i32 : i32 to index
    %c0_2 = arith.constant 0 : index
    %c0_3 = arith.constant 0 : index
    %c0_4 = arith.constant 0 : index
    %5 = vector.load %arg3[%4, %c0_2, %c0_3, %c0_4] : memref<4x2x1x128xf32, #tpu.memory_space<vmem>>, vector<1x2x1x128xf32>
    %6 = vector.shape_cast %5 : vector<1x2x1x128xf32> to vector<2x1x128xf32>
    %7 = arith.index_cast %c0_i32 : i32 to index
    %c0_5 = arith.constant 0 : index
    %c0_6 = arith.constant 0 : index
    %c0_7 = arith.constant 0 : index
    %8 = vector.load %arg4[%7, %c0_5, %c0_6, %c0_7] : memref<4x1x4x128xf32, #tpu.memory_space<vmem>>, vector<1x1x4x128xf32>
    %9 = vector.shape_cast %8 : vector<1x1x4x128xf32> to vector<1x4x128xf32>
    %10 = arith.index_cast %c0_i32 : i32 to index
    %c0_8 = arith.constant 0 : index
    %c0_9 = arith.constant 0 : index
    %c0_10 = arith.constant 0 : index
    %11 = vector.load %arg5[%10, %c0_8, %c0_9, %c0_10] : memref<4x1x4x128xf32, #tpu.memory_space<vmem>>, vector<1x1x4x128xf32>
    %12 = vector.shape_cast %11 : vector<1x1x4x128xf32> to vector<1x4x128xf32>
    %13 = vector.broadcast %3 : vector<2x1x128xf32> to vector<2x4x128xf32>
    %14 = vector.broadcast %9 : vector<1x4x128xf32> to vector<2x4x128xf32>
    %15 = arith.mulf %13, %14 : vector<2x4x128xf32>
    %16 = arith.addf %0, %15 : vector<2x4x128xf32>
    %17 = vector.broadcast %6 : vector<2x1x128xf32> to vector<2x4x128xf32>
    %18 = vector.broadcast %12 : vector<1x4x128xf32> to vector<2x4x128xf32>
    %19 = arith.mulf %17, %18 : vector<2x4x128xf32>
    %20 = arith.subf %16, %19 : vector<2x4x128xf32>
    %21 = vector.broadcast %3 : vector<2x1x128xf32> to vector<2x4x128xf32>
    %22 = vector.broadcast %12 : vector<1x4x128xf32> to vector<2x4x128xf32>
    %23 = arith.mulf %21, %22 : vector<2x4x128xf32>
    %24 = arith.addf %0, %23 : vector<2x4x128xf32>
    %25 = vector.broadcast %6 : vector<2x1x128xf32> to vector<2x4x128xf32>
    %26 = vector.broadcast %9 : vector<1x4x128xf32> to vector<2x4x128xf32>
    %27 = arith.mulf %25, %26 : vector<2x4x128xf32>
    %28 = arith.addf %24, %27 : vector<2x4x128xf32>
    %c1_i32 = arith.constant 1 : i32
    %29 = arith.index_cast %c1_i32 : i32 to index
    %c0_11 = arith.constant 0 : index
    %c0_12 = arith.constant 0 : index
    %c0_13 = arith.constant 0 : index
    %30 = vector.load %arg2[%29, %c0_11, %c0_12, %c0_13] : memref<4x2x1x128xf32, #tpu.memory_space<vmem>>, vector<1x2x1x128xf32>
    %31 = vector.shape_cast %30 : vector<1x2x1x128xf32> to vector<2x1x128xf32>
    %32 = arith.index_cast %c1_i32 : i32 to index
    %c0_14 = arith.constant 0 : index
    %c0_15 = arith.constant 0 : index
    %c0_16 = arith.constant 0 : index
    %33 = vector.load %arg3[%32, %c0_14, %c0_15, %c0_16] : memref<4x2x1x128xf32, #tpu.memory_space<vmem>>, vector<1x2x1x128xf32>
    %34 = vector.shape_cast %33 : vector<1x2x1x128xf32> to vector<2x1x128xf32>
    %35 = arith.index_cast %c1_i32 : i32 to index
    %c0_17 = arith.constant 0 : index
    %c0_18 = arith.constant 0 : index
    %c0_19 = arith.constant 0 : index
    %36 = vector.load %arg4[%35, %c0_17, %c0_18, %c0_19] : memref<4x1x4x128xf32, #tpu.memory_space<vmem>>, vector<1x1x4x128xf32>
    %37 = vector.shape_cast %36 : vector<1x1x4x128xf32> to vector<1x4x128xf32>
    %38 = arith.index_cast %c1_i32 : i32 to index
    %c0_20 = arith.constant 0 : index
    %c0_21 = arith.constant 0 : index
    %c0_22 = arith.constant 0 : index
    %39 = vector.load %arg5[%38, %c0_20, %c0_21, %c0_22] : memref<4x1x4x128xf32, #tpu.memory_space<vmem>>, vector<1x1x4x128xf32>
    %40 = vector.shape_cast %39 : vector<1x1x4x128xf32> to vector<1x4x128xf32>
    %41 = vector.broadcast %31 : vector<2x1x128xf32> to vector<2x4x128xf32>
    %42 = vector.broadcast %37 : vector<1x4x128xf32> to vector<2x4x128xf32>
    %43 = arith.mulf %41, %42 : vector<2x4x128xf32>
    %44 = arith.addf %20, %43 : vector<2x4x128xf32>
    %45 = vector.broadcast %34 : vector<2x1x128xf32> to vector<2x4x128xf32>
    %46 = vector.broadcast %40 : vector<1x4x128xf32> to vector<2x4x128xf32>
    %47 = arith.mulf %45, %46 : vector<2x4x128xf32>
    %48 = arith.subf %44, %47 : vector<2x4x128xf32>
    %49 = vector.broadcast %31 : vector<2x1x128xf32> to vector<2x4x128xf32>
    %50 = vector.broadcast %40 : vector<1x4x128xf32> to vector<2x4x128xf32>
    %51 = arith.mulf %49, %50 : vector<2x4x128xf32>
    %52 = arith.addf %28, %51 : vector<2x4x128xf32>
    %53 = vector.broadcast %34 : vector<2x1x128xf32> to vector<2x4x128xf32>
    %54 = vector.broadcast %37 : vector<1x4x128xf32> to vector<2x4x128xf32>
    %55 = arith.mulf %53, %54 : vector<2x4x128xf32>
    %56 = arith.addf %52, %55 : vector<2x4x128xf32>
    %c2_i32 = arith.constant 2 : i32
    %57 = arith.index_cast %c2_i32 : i32 to index
    %c0_23 = arith.constant 0 : index
    %c0_24 = arith.constant 0 : index
    %c0_25 = arith.constant 0 : index
    %58 = vector.load %arg2[%57, %c0_23, %c0_24, %c0_25] : memref<4x2x1x128xf32, #tpu.memory_space<vmem>>, vector<1x2x1x128xf32>
    %59 = vector.shape_cast %58 : vector<1x2x1x128xf32> to vector<2x1x128xf32>
    %60 = arith.index_cast %c2_i32 : i32 to index
    %c0_26 = arith.constant 0 : index
    %c0_27 = arith.constant 0 : index
    %c0_28 = arith.constant 0 : index
    %61 = vector.load %arg3[%60, %c0_26, %c0_27, %c0_28] : memref<4x2x1x128xf32, #tpu.memory_space<vmem>>, vector<1x2x1x128xf32>
    %62 = vector.shape_cast %61 : vector<1x2x1x128xf32> to vector<2x1x128xf32>
    %63 = arith.index_cast %c2_i32 : i32 to index
    %c0_29 = arith.constant 0 : index
    %c0_30 = arith.constant 0 : index
    %c0_31 = arith.constant 0 : index
    %64 = vector.load %arg4[%63, %c0_29, %c0_30, %c0_31] : memref<4x1x4x128xf32, #tpu.memory_space<vmem>>, vector<1x1x4x128xf32>
    %65 = vector.shape_cast %64 : vector<1x1x4x128xf32> to vector<1x4x128xf32>
    %66 = arith.index_cast %c2_i32 : i32 to index
    %c0_32 = arith.constant 0 : index
    %c0_33 = arith.constant 0 : index
    %c0_34 = arith.constant 0 : index
    %67 = vector.load %arg5[%66, %c0_32, %c0_33, %c0_34] : memref<4x1x4x128xf32, #tpu.memory_space<vmem>>, vector<1x1x4x128xf32>
    %68 = vector.shape_cast %67 : vector<1x1x4x128xf32> to vector<1x4x128xf32>
    %69 = vector.broadcast %59 : vector<2x1x128xf32> to vector<2x4x128xf32>
    %70 = vector.broadcast %65 : vector<1x4x128xf32> to vector<2x4x128xf32>
    %71 = arith.mulf %69, %70 : vector<2x4x128xf32>
    %72 = arith.addf %48, %71 : vector<2x4x128xf32>
    %73 = vector.broadcast %62 : vector<2x1x128xf32> to vector<2x4x128xf32>
    %74 = vector.broadcast %68 : vector<1x4x128xf32> to vector<2x4x128xf32>
    %75 = arith.mulf %73, %74 : vector<2x4x128xf32>
    %76 = arith.subf %72, %75 : vector<2x4x128xf32>
    %77 = vector.broadcast %59 : vector<2x1x128xf32> to vector<2x4x128xf32>
    %78 = vector.broadcast %68 : vector<1x4x128xf32> to vector<2x4x128xf32>
    %79 = arith.mulf %77, %78 : vector<2x4x128xf32>
    %80 = arith.addf %56, %79 : vector<2x4x128xf32>
    %81 = vector.broadcast %62 : vector<2x1x128xf32> to vector<2x4x128xf32>
    %82 = vector.broadcast %65 : vector<1x4x128xf32> to vector<2x4x128xf32>
    %83 = arith.mulf %81, %82 : vector<2x4x128xf32>
    %84 = arith.addf %80, %83 : vector<2x4x128xf32>
    %c3_i32 = arith.constant 3 : i32
    %85 = arith.index_cast %c3_i32 : i32 to index
    %c0_35 = arith.constant 0 : index
    %c0_36 = arith.constant 0 : index
    %c0_37 = arith.constant 0 : index
    %86 = vector.load %arg2[%85, %c0_35, %c0_36, %c0_37] : memref<4x2x1x128xf32, #tpu.memory_space<vmem>>, vector<1x2x1x128xf32>
    %87 = vector.shape_cast %86 : vector<1x2x1x128xf32> to vector<2x1x128xf32>
    %88 = arith.index_cast %c3_i32 : i32 to index
    %c0_38 = arith.constant 0 : index
    %c0_39 = arith.constant 0 : index
    %c0_40 = arith.constant 0 : index
    %89 = vector.load %arg3[%88, %c0_38, %c0_39, %c0_40] : memref<4x2x1x128xf32, #tpu.memory_space<vmem>>, vector<1x2x1x128xf32>
    %90 = vector.shape_cast %89 : vector<1x2x1x128xf32> to vector<2x1x128xf32>
    %91 = arith.index_cast %c3_i32 : i32 to index
    %c0_41 = arith.constant 0 : index
    %c0_42 = arith.constant 0 : index
    %c0_43 = arith.constant 0 : index
    %92 = vector.load %arg4[%91, %c0_41, %c0_42, %c0_43] : memref<4x1x4x128xf32, #tpu.memory_space<vmem>>, vector<1x1x4x128xf32>
    %93 = vector.shape_cast %92 : vector<1x1x4x128xf32> to vector<1x4x128xf32>
    %94 = arith.index_cast %c3_i32 : i32 to index
    %c0_44 = arith.constant 0 : index
    %c0_45 = arith.constant 0 : index
    %c0_46 = arith.constant 0 : index
    %95 = vector.load %arg5[%94, %c0_44, %c0_45, %c0_46] : memref<4x1x4x128xf32, #tpu.memory_space<vmem>>, vector<1x1x4x128xf32>
    %96 = vector.shape_cast %95 : vector<1x1x4x128xf32> to vector<1x4x128xf32>
    %97 = vector.broadcast %87 : vector<2x1x128xf32> to vector<2x4x128xf32>
    %98 = vector.broadcast %93 : vector<1x4x128xf32> to vector<2x4x128xf32>
    %99 = arith.mulf %97, %98 : vector<2x4x128xf32>
    %100 = arith.addf %76, %99 : vector<2x4x128xf32>
    %101 = vector.broadcast %90 : vector<2x1x128xf32> to vector<2x4x128xf32>
    %102 = vector.broadcast %96 : vector<1x4x128xf32> to vector<2x4x128xf32>
    %103 = arith.mulf %101, %102 : vector<2x4x128xf32>
    %104 = arith.subf %100, %103 : vector<2x4x128xf32>
    %105 = vector.broadcast %87 : vector<2x1x128xf32> to vector<2x4x128xf32>
    %106 = vector.broadcast %96 : vector<1x4x128xf32> to vector<2x4x128xf32>
    %107 = arith.mulf %105, %106 : vector<2x4x128xf32>
    %108 = arith.addf %84, %107 : vector<2x4x128xf32>
    %109 = vector.broadcast %90 : vector<2x1x128xf32> to vector<2x4x128xf32>
    %110 = vector.broadcast %93 : vector<1x4x128xf32> to vector<2x4x128xf32>
    %111 = arith.mulf %109, %110 : vector<2x4x128xf32>
    %112 = arith.addf %108, %111 : vector<2x4x128xf32>
    %c4_i32 = arith.constant 4 : i32
    %c0_47 = arith.constant 0 : index
    %c0_48 = arith.constant 0 : index
    %c0_49 = arith.constant 0 : index
    %113 = vector.load %arg6[%c0_47, %c0_48, %c0_49] : memref<2x4x128xf32, #tpu.memory_space<vmem>>, vector<2x4x128xf32>
    tpu.vector_store %arg6[%c0_47, %c0_48, %c0_49], %104 {strides = array<i32>} : memref<2x4x128xf32, #tpu.memory_space<vmem>>, vector<2x4x128xf32>,
    %c0_50 = arith.constant 0 : index
    %c0_51 = arith.constant 0 : index
    %c0_52 = arith.constant 0 : index
    %114 = vector.load %arg7[%c0_50, %c0_51, %c0_52] : memref<2x4x128xf32, #tpu.memory_space<vmem>>, vector<2x4x128xf32>
    tpu.vector_store %arg7[%c0_50, %c0_51, %c0_52], %112 {strides = array<i32>} : memref<2x4x128xf32, #tpu.memory_space<vmem>>, vector<2x4x128xf32>,
    return
  }
  func.func @transform_0(%arg0: i32, %arg1: i32) -> (i32, i32, i32, i32) {
    %c0_i32 = arith.constant 0 : i32
    %c0_i32_0 = arith.constant 0 : i32
    %c0_i32_1 = arith.constant 0 : i32
    return %c0_i32, %arg1, %c0_i32_0, %arg0 : i32, i32, i32, i32
  }
  func.func @transform_1(%arg0: i32, %arg1: i32) -> (i32, i32, i32, i32) {
    %c0_i32 = arith.constant 0 : i32
    %c0_i32_0 = arith.constant 0 : i32
    %c0_i32_1 = arith.constant 0 : i32
    return %c0_i32, %arg1, %c0_i32_0, %arg0 : i32, i32, i32, i32
  }
  func.func @transform_2(%arg0: i32, %arg1: i32) -> (i32, i32, i32, i32) {
    %c0_i32 = arith.constant 0 : i32
    %c0_i32_0 = arith.constant 0 : i32
    %c0_i32_1 = arith.constant 0 : i32
    %c0_i32_2 = arith.constant 0 : i32
    return %c0_i32, %c0_i32_0, %c0_i32_1, %arg0 : i32, i32, i32, i32
  }
  func.func @transform_3(%arg0: i32, %arg1: i32) -> (i32, i32, i32, i32) {
    %c0_i32 = arith.constant 0 : i32
    %c0_i32_0 = arith.constant 0 : i32
    %c0_i32_1 = arith.constant 0 : i32
    %c0_i32_2 = arith.constant 0 : i32
    return %c0_i32, %c0_i32_0, %c0_i32_1, %arg0 : i32, i32, i32, i32
  }
  func.func @transform_4(%arg0: i32, %arg1: i32) -> (i32, i32, i32) {
    %c0_i32 = arith.constant 0 : i32
    %c0_i32_0 = arith.constant 0 : i32
    return %arg1, %c0_i32, %arg0 : i32, i32, i32
  }
  func.func @transform_5(%arg0: i32, %arg1: i32) -> (i32, i32, i32) {
    %c0_i32 = arith.constant 0 : i32
    %c0_i32_0 = arith.constant 0 : i32
    return %arg1, %c0_i32, %arg0 : i32, i32, i32
  }
}

</mosaic_0001>

<bundles_post_ra>
// kernel: tpu_custom_call.1
= control target key start
LH: loop header
LB: loop body
LE: loop exit
PB: predicated region body
PF: predicated region fallthrough
CT: control target
= control target key end

     0   :  { %11 = vsyncpa [#allocation3], 0  ;;  %s543_s0 = inlined_call_operand.hbm [shape: f32[4,2,1,128], index: 0, kind: input, shape index: {}]   ;;  %s544_s1 = inlined_call_operand.hbm [shape: f32[4,2,1,128], index: 1, kind: input, shape index: {}]   ;;  %s545_s2 = inlined_call_operand.hbm [shape: f32[4,1,4,128], index: 2, kind: input, shape index: {}]   ;;  %s546_s3 = inlined_call_operand.hbm [shape: f32[4,1,4,128], index: 3, kind: input, shape index: {}]   ;;  %s547_s4 = inlined_call_operand.hbm [shape: f32[2,4,128], index: 4, kind: output, shape index: {0}]   ;;  %s548_s5 = inlined_call_operand.hbm [shape: f32[2,4,128], index: 5, kind: output, shape index: {1}]  }
   0x1   :  { %12 = vsyncpa [#allocation6], 0 }
   0x2   :  { %13 = vsyncpa [#allocation9], 0 }
   0x3   :  { %14 = vsyncpa [#allocation4], 0 }
   0x4   :  { %15 = vsyncpa [#allocation12], 0  ;;  %s467_s18 = smov [#allocation5]   ;;  %s468_s20 = smov [#allocation2]  }
   0x5   :  { %s33_s19 = sshll.u32 %s467_s18, 4  ;;  %s21_s21 = sshll.u32 %s468_s20, 4  ;;  %s34_s19 = int_to_ptr.vmem [resolvable:$true] %s33_s19  ;;  %s22_s21 = int_to_ptr.vmem [resolvable:$true] %s21_s21 }
   0x6   :  { %s345_s22 = scalar_lea.vmem %s34_s19, 128  ;;  %p350_p1 = scmp.lt.s32.totalorder %s34_s19, %s34_s19 }
   0x7   :  { %p346_p0 = scmp.ne.s32.totalorder %s34_s19, %s345_s22  ;;  %p351_p2 = scmp.lt.s32.totalorder %s345_s22, %s345_s22 }
   0x9   :  { %p352_p3 = por %p351_p2, %p350_p1 }
   0xb   :  { %p353_p4 = pnand %p352_p3, %p346_p0 }
   0xd   :  { %356 = shalt.err (!%p353_p4)
}
   0xe   :  { %s469_s23 = smov 16   ;;  %s470_s24 = smov 1  }
   0xf   :  { %39 = dma.hbm_to_vmem [thread:$0]  %s544_s1, 128, %s34_s19, [#allocation6], %s469_s23, %s469_s23, %s470_s24  }
  0x10   :  { %s365_s27 = scalar_lea.vmem %s22_s21, 128  ;;  %p370_p6 = scmp.lt.s32.totalorder %s22_s21, %s22_s21 }
  0x11   :  { %p366_p5 = scmp.ne.s32.totalorder %s22_s21, %s365_s27  ;;  %p371_p7 = scmp.lt.s32.totalorder %s365_s27, %s365_s27 }
  0x13   :  { %p372_p8 = por %p371_p7, %p370_p6 }
  0x15   :  { %p373_p9 = pnand %p372_p8, %p366_p5 }
  0x17   :  { %376 = shalt.err (!%p373_p9)
}
  0x18   :  { %27 = dma.hbm_to_vmem [thread:$0]  %s543_s0, 128, %s22_s21, [#allocation3], %s469_s23, %s469_s23, %s470_s24  }
  0x19   :  { %s471_s30 = smov [#allocation7]  }
  0x1a   :  { %s45_s6 = sshll.u32 %s471_s30, 4  ;;  %s46_s6 = int_to_ptr.vmem [resolvable:$true] %s45_s6 }
  0x1b   :  { %s385_s7 = scalar_lea.vmem %s46_s6, 256  ;;  %p390_p11 = scmp.lt.s32.totalorder %s46_s6, %s46_s6 }
  0x1c   :  { %p386_p10 = scmp.ne.s32.totalorder %s46_s6, %s385_s7  ;;  %p391_p12 = scmp.lt.s32.totalorder %s385_s7, %s385_s7 }
  0x1e   :  { %p392_p13 = por %p391_p12, %p390_p11 }
  0x20   :  { %p393_p0 = pnand %p392_p13, %p386_p10 }
  0x22   :  { %396 = shalt.err (!%p393_p0)
}
  0x23   :  { %s472_s1 = smov 64   ;;  %s473_s8 = smov 4  }
  0x24   :  { %51 = dma.hbm_to_vmem [thread:$0]  %s545_s2, 256, %s46_s6, [#allocation6], %s472_s1, %s472_s1, %s473_s8  }
  0x25   :  { %s474_s0 = smov [#allocation8]  }
  0x26   :  { %s57_s11 = sshll.u32 %s474_s0, 4  ;;  %s58_s11 = int_to_ptr.vmem [resolvable:$true] %s57_s11 }
  0x27   :  { %s405_s12 = scalar_lea.vmem %s58_s11, 256  ;;  %p410_p2 = scmp.lt.s32.totalorder %s58_s11, %s58_s11 }
  0x28   :  { %p406_p1 = scmp.ne.s32.totalorder %s58_s11, %s405_s12  ;;  %p411_p3 = scmp.lt.s32.totalorder %s405_s12, %s405_s12 }
  0x2a   :  { %p412_p4 = por %p411_p3, %p410_p2 }
  0x2c   :  { %p413_p5 = pnand %p412_p4, %p406_p1 }
  0x2e   :  { %416 = shalt.err (!%p413_p5)
}
  0x2f   :  { %63 = dma.hbm_to_vmem [thread:$0]  %s546_s3, 256, %s58_s11, [#allocation9], %s472_s1, %s472_s1, %s473_s8  }
  0x30   :  { %457 = dma.done.wait [#allocation3], 128  }
  0x31   :  { %458 = vsyncadd [#allocation3], 4294967168 }
  0x32   :  { %459 = dma.done.wait [#allocation6], 384  }
  0x33   :  { %460 = vsyncadd [#allocation6], 4294966912 }
  0x34   :  { %461 = dma.done.wait [#allocation9], 256  }
  0x35   :  { %462 = vsyncadd [#allocation9], 4294967040  ;;  %v311_v0 = vld [vmem:[#allocation2] ss:$0 sm:$0xff]  ;;  %v313_v1 = vld [vmem:[#allocation5] ss:$0 sm:$0xff] }
  0x36   :  { %v80_v2 = vld [vmem:[#allocation7] sm:$0xf]  ;;  %v81_v3 = vld [vmem:[#allocation8] sm:$0xf]  ;;  %v317_v6 = vld [vmem:[#allocation5 + $0x2] ss:$0 sm:$0xff] }
  0x37   :  { %v94_v4 = vmul.f32 %v311_v0, %v80_v2  ;;  %v315_v5 = vld [vmem:[#allocation2 + $0x2] ss:$0 sm:$0xff]  ;;  %v118_v7 = vmul.f32 %v313_v1, %v80_v2  ;;  %v110_v8 = vmul.f32 %v313_v1, %v81_v3  ;;  %v129_v9 = vld [vmem:[#allocation7 + $0x4] sm:$0xf]  ;;  %v131_v10 = vld [vmem:[#allocation8 + $0x4] sm:$0xf]  ;;  %v114_v11 = vmul.f32 %v311_v0, %v81_v3 }
  0x38   :  { %v144_v12 = vmul.f32 %v315_v5, %v129_v9  ;;  %v319_v13 = vld [vmem:[#allocation2 + $0x4] ss:$0 sm:$0xff]  ;;  %v179_v14 = vld [vmem:[#allocation7 + $0x8] sm:$0xf]  ;;  %v164_v15 = vmul.f32 %v315_v5, %v131_v10  ;;  %v160_v17 = vmul.f32 %v317_v6, %v131_v10  ;;  %v321_v18 = vld [vmem:[#allocation5 + $0x4] ss:$0 sm:$0xff]  ;;  %v168_v25 = vmul.f32 %v317_v6, %v129_v9 }
  0x39   :  { %v112_v16 = vsub.f32 %v94_v4, %v110_v8  ;;  %v181_v19 = vld [vmem:[#allocation8 + $0x8] sm:$0xf]  ;;  %v323_v20 = vld [vmem:[#allocation2 + $0x6] ss:$0 sm:$0xff]  ;;  %v120_v21 = vadd.f32 %v118_v7, %v114_v11  ;;  %v525_v22 = vld [vmem:[#allocation7 + $0xc] sm:$0xf]  ;;  %v194_v27 = vmul.f32 %v319_v13, %v179_v14  ;;  %v218_v46 = vmul.f32 %v321_v18, %v179_v14 }
  0x3a   :  { %v312_v23 = vld [vmem:[#allocation2 + $0x1] ss:$0 sm:$0xff]  ;;  %v314_v24 = vld [vmem:[#allocation5 + $0x1] ss:$0 sm:$0xff]  ;;  %v316_v30 = vld [vmem:[#allocation2 + $0x3] ss:$0 sm:$0xff]  ;;  %v210_v33 = vmul.f32 %v321_v18, %v181_v19  ;;  %v214_v36 = vmul.f32 %v319_v13, %v181_v19  ;;  %v244_v40 = vmul.f32 %v323_v20, %v525_v22 }
  0x3b   :  { %v146_v26 = vadd.f32 %v144_v12, %v112_v16  ;;  %v95_v28 = vmul.f32 %v312_v23, %v80_v2  ;;  %v111_v29 = vmul.f32 %v314_v24, %v81_v3  ;;  %v318_v31 = vld [vmem:[#allocation5 + $0x3] ss:$0 sm:$0xff]  ;;  %v320_v32 = vld [vmem:[#allocation2 + $0x5] ss:$0 sm:$0xff]  ;;  %v145_v34 = vmul.f32 %v316_v30, %v129_v9  ;;  %v325_v38 = vld [vmem:[#allocation5 + $0x6] ss:$0 sm:$0xff] }
  0x3c   :  { %v166_v35 = vadd.f32 %v164_v15, %v120_v21  ;;  %v231_v39 = vld [vmem:[#allocation8 + $0xc] sm:$0xf]  ;;  %v161_v42 = vmul.f32 %v318_v31, %v131_v10  ;;  %v195_v44 = vmul.f32 %v320_v32, %v179_v14  ;;  %v115_v47 = vmul.f32 %v312_v23, %v81_v3  ;;  %v324_v50 = vld [vmem:[#allocation2 + $0x7] ss:$0 sm:$0xff]  ;;  %s475_s2 = smov [#allocation10]   ;;  %s476_s15 = smov [#allocation11]  }
  0x3d   :  { %v162_v37 = vsub.f32 %v146_v26, %v160_v17  ;;  %v113_v41 = vsub.f32 %v95_v28, %v111_v29  ;;  %v322_v43 = vld [vmem:[#allocation5 + $0x5] ss:$0 sm:$0xff]  ;;  %v119_v51 = vmul.f32 %v314_v24, %v80_v2  ;;  %v165_v52 = vmul.f32 %v316_v30, %v131_v10  ;;  %v326_v59 = vld [vmem:[#allocation5 + $0x7] ss:$0 sm:$0xff]  ;;  %s281_s3 = sshll.u32 %s475_s2, 4  ;;  %s293_s16 = sshll.u32 %s476_s15, 4  ;;  %s282_s3 = int_to_ptr.vmem [resolvable:$true] %s281_s3  ;;  %s294_s16 = int_to_ptr.vmem [resolvable:$true] %s293_s16 }
  0x3e   :  { %v170_v45 = vadd.f32 %v168_v25, %v166_v35  ;;  %v260_v53 = vmul.f32 %v325_v38, %v231_v39  ;;  %v211_v54 = vmul.f32 %v322_v43, %v181_v19  ;;  %v264_v56 = vmul.f32 %v323_v20, %v231_v39  ;;  %s417_s17 = scalar_lea.vmem %s282_s3, 128  ;;  %p422_p7 = scmp.lt.s32.totalorder %s282_s3, %s282_s3 }
  0x3f   :  { %v196_v48 = vadd.f32 %v194_v27, %v162_v37  ;;  %v147_v49 = vadd.f32 %v145_v34, %v113_v41  ;;  %v121_v60 = vadd.f32 %v119_v51, %v115_v47  ;;  %v169_v61 = vmul.f32 %v318_v31, %v129_v9  ;;  %p418_p6 = scmp.ne.s32.totalorder %s282_s3, %s417_s17  ;;  %p423_p8 = scmp.lt.s32.totalorder %s417_s17, %s417_s17 }
  0x40   :  { %v216_v55 = vadd.f32 %v214_v36, %v170_v45  ;;  %v245_v62 = vmul.f32 %v324_v50, %v525_v22  ;;  %v268_v0 = vmul.f32 %v325_v38, %v525_v22  ;;  %v215_v5 = vmul.f32 %v320_v32, %v181_v19 }
  0x41   :  { %v212_v57 = vsub.f32 %v196_v48, %v210_v33  ;;  %v163_v58 = vsub.f32 %v147_v49, %v161_v42  ;;  %v167_v4 = vadd.f32 %v165_v52, %v121_v60  ;;  %v261_v2 = vmul.f32 %v326_v59, %v231_v39  ;;  %p424_p9 = por %p423_p8, %p422_p7 }
  0x42   :  { %v220_v63 = vadd.f32 %v218_v46, %v216_v55  ;;  %v219_v11 = vmul.f32 %v322_v43, %v179_v14  ;;  %v265_v15 = vmul.f32 %v324_v50, %v231_v39  ;;  %v269_v18 = vmul.f32 %v326_v59, %v525_v22 }
  0x43   :  { %v246_v1 = vadd.f32 %v244_v40, %v212_v57  ;;  %v197_v3 = vadd.f32 %v195_v44, %v163_v58  ;;  %v171_v10 = vadd.f32 %v169_v61, %v167_v4  ;;  %p425_p10 = pnand %p424_p9, %p418_p6 }
  0x44   :  { %v266_v6 = vadd.f32 %v264_v56, %v220_v63 }
  0x45   :  { %v262_v7 = vsub.f32 %v246_v1, %v260_v53  ;;  %v213_v8 = vsub.f32 %v197_v3, %v211_v54  ;;  %v217_v13 = vadd.f32 %v215_v5, %v171_v10 }
  0x46   :  { %v270_v12 = vadd.f32 %v268_v0, %v266_v6 }
  0x47   :  { %272 = vst [vmem:[#allocation10] sm:$0xf] %v262_v7  ;;  %v247_v9 = vadd.f32 %v245_v62, %v213_v8  ;;  %v221_v17 = vadd.f32 %v219_v11, %v217_v13 }
  0x48   :  { %274 = vst [vmem:[#allocation11] sm:$0xf] %v270_v12 }
  0x49   :  { %v263_v16 = vsub.f32 %v247_v9, %v261_v2  ;;  %v267_v19 = vadd.f32 %v265_v15, %v221_v17 }
  0x4b   :  { %273 = vst [vmem:[#allocation10 + $0x4] sm:$0xf] %v263_v16 }
  0x4c   :  { %428 = shalt.err (!%p425_p10)
}
  0x4d   :  { %287 = dma.vmem_to_hbm [thread:$0]  %s282_s3, 128, %s547_s4, [#allocation4], %s472_s1, %s472_s1, %s473_s8   ;;  %v271_v14 = vadd.f32 %v269_v18, %v267_v19 }
  0x4e   :  { %s437_s20 = scalar_lea.vmem %s294_s16, 128  ;;  %p442_p12 = scmp.lt.s32.totalorder %s294_s16, %s294_s16 }
  0x4f   :  { %275 = vst [vmem:[#allocation11 + $0x4] sm:$0xf] %v271_v14  ;;  %p438_p11 = scmp.ne.s32.totalorder %s294_s16, %s437_s20  ;;  %p443_p13 = scmp.lt.s32.totalorder %s437_s20, %s437_s20 }
  0x51   :  { %p444_p0 = por %p443_p13, %p442_p12 }
  0x53   :  { %p445_p1 = pnand %p444_p0, %p438_p11 }
  0x55   :  { %448 = shalt.err (!%p445_p1)
}
  0x56   :  { %299 = dma.vmem_to_hbm [thread:$0]  %s294_s16, 128, %s548_s5, [#allocation12], %s472_s1, %s472_s1, %s473_s8  }
  0x57   :  { %463 = dma.done.wait [#allocation4], 128  }
  0x58   :  { %464 = vsyncadd [#allocation4], 4294967168 }
  0x59   :  { %465 = dma.done.wait [#allocation12], 128  }
  0x5a   :  { %466 = vsyncadd [#allocation12], 4294967168 }
  0x5b   :  { %306 = vsyncpa [#allocation3], 1 }
  0x5c   :  { %307 = vsyncpa [#allocation6], 1 }
  0x5d   :  { %308 = vsyncpa [#allocation9], 1 }
  0x5e   :  { %309 = vsyncpa [#allocation4], 1 }
  0x5f   :  { %310 = vsyncpa [#allocation12], 1 }

</bundles_post_ra>
